<compile_context>
chip_gen: v7x
topology: tpu7x:2x2x1
jax: 0.10.0
libtpu: 0.0.40
codegen_flags: <defaults>
</compile_context>

<pallas_src>
import jax
import jax.numpy as jnp
from jax.experimental import pallas as pl
from jax.experimental.pallas import tpu as pltpu

IN_FEATURES = 2
HIDDEN = 10
CLASSES = 2

LANES = 128      # vreg lane width
SUBLANES = 8     # f32 vreg sublane count


def mlp_kernel(params_ref, b2d_ref, x_ref, o_ref):
    # params_ref: SMEM [HIDDEN, 4], row j = (w1[0,j], w1[1,j], b1[j], w2[j,1]-w2[j,0])
    # b2d_ref   : SMEM [1],        b2[1] - b2[0]
    # x_ref     : VMEM [2, R, 128], batch packed dense on (sublane, lane); x_ref[f] = feature f
    # o_ref     : VMEM [2, R, 128], o_ref[c] = class-c probability
    x0 = x_ref[0]                        # [R, 128] dense slab -> full vreg width VPU work
    x1 = x_ref[1]                        # [R, 128]

    # Accumulate only the logit difference d = y1 - y0; pure VPU broadcast-FMAs (no MXU,
    # no [B, HIDDEN] intermediate, no second accumulator).
    d = b2d_ref[0] + jnp.zeros_like(x0)
    for j in range(HIDDEN):              # static unroll over the 10 hidden units
        h = jnp.maximum(
            params_ref[j, 0] * x0 + params_ref[j, 1] * x1 + params_ref[j, 2], 0.0)
        d = d + params_ref[j, 3] * h

    # 2-class softmax closed form: p0 = 1 / (1 + exp(y1 - y0)); p1 = 1 - p0.
    # Clamp d so exp never overflows to +inf; exp + approx reciprocal run on the EUP slot,
    # no cross-lane (XLU) reduction anywhere.  Note: approx reciprocal carries ~1e-4 relative
    # error, so p0 may sit marginally outside [0,1]; p0 + p1 is still (bitwise-nearly) 1.
    d = jnp.minimum(d, 30.0)
    p0 = pl.reciprocal(1.0 + jnp.exp(d), approx=True)
    o_ref[0] = p0                        # full-tile, lane-dense unmasked stores
    o_ref[1] = 1.0 - p0


def _round_up(a, b):
    return -(-a // b) * b


def network_forward(x, w1, b1, w2, b2, *, max_rows_per_tile=1024):
    """x: [B, 2] -> softmax probabilities [B, 2].

    Weights are pre-transposed vs. PyTorch nn.Linear ([out,in] -> [in,out]):
    w1 [2,10], b1 [10], w2 [10,2], b2 [2].
    """
    B = x.shape[0]

    # Batch tiling: rows of 128 samples; R rows per grid step (multiple of 8 -> dense sublanes).
    # Default R=1024 -> 131072 samples and 1 MiB per streamed block; for tiny B this shrinks so
    # padding stays negligible.  (On v7x the 2-TC split only kicks in once n_tiles >= 2, which
    # large batches give naturally.)
    rows = -(-B // LANES)
    R = min(max_rows_per_tile, _round_up(rows, SUBLANES))
    n_tiles = -(-rows // R)
    rows_pad = n_tiles * R
    b_pad = rows_pad * LANES

    # Wrapper-side layout plumbing: [B,2] -> feature-major [2, rows_pad, 128], zero-padded.
    xT = jnp.zeros((IN_FEATURES, b_pad), jnp.float32).at[:, :B].set(
        x.astype(jnp.float32).T)
    xT = xT.reshape(IN_FEATURES, rows_pad, LANES)

    # Fold the tiny parameters into one SMEM table + a single scalar:
    #   row j = (w1[0,j], w1[1,j], b1[j], w2[j,1]-w2[j,0]);   b2d = b2[1]-b2[0].
    w1f = w1.astype(jnp.float32)
    b1f = b1.astype(jnp.float32)
    w2f = w2.astype(jnp.float32)
    b2f = b2.astype(jnp.float32)
    params = jnp.stack([w1f[0], w1f[1], b1f, w2f[:, 1] - w2f[:, 0]], axis=1)  # [HIDDEN, 4]
    b2d = (b2f[1] - b2f[0]).reshape(1)

    outT = pl.pallas_call(
        mlp_kernel,
        out_shape=jax.ShapeDtypeStruct((CLASSES, rows_pad, LANES), jnp.float32),
        grid_spec=pltpu.PrefetchScalarGridSpec(
            num_scalar_prefetch=0,
            grid=(n_tiles,),
            in_specs=[
                # Tiny parameters: whole arrays resident in SMEM for the entire grid.
                pl.BlockSpec(memory_space=pltpu.MemorySpace.SMEM),   # params [10, 4]
                pl.BlockSpec(memory_space=pltpu.MemorySpace.SMEM),   # b2d    [1]
                # (8,128)-dense batch tile of the feature-major input.
                pl.BlockSpec((IN_FEATURES, R, LANES), lambda i: (0, i, 0)),
            ],
            out_specs=pl.BlockSpec((CLASSES, R, LANES), lambda i: (0, i, 0)),
        ),
        compiler_params=pltpu.CompilerParams(
            # Independent batch tiles -> shard across v7x's two TensorCores
            # (harmless no-op on v5e/v6e).
            dimension_semantics=("parallel",),
        ),
    )(params, b2d, xT)

    return outT.reshape(CLASSES, b_pad)[:, :B].T


def reference_forward(x, w1, b1, w2, b2):
    h = jnp.maximum(x @ w1 + b1, 0.0)
    y = h @ w2 + b2
    return jax.nn.softmax(y, axis=1)


if __name__ == "__main__":
    key = jax.random.PRNGKey(0)
    k_x, k_w1, k_b1, k_w2, k_b2 = jax.random.split(key, 5)

    B = 8                               # small batch of 2-D points
    x = jax.random.normal(k_x, (B, IN_FEATURES), dtype=jnp.float32)

    # Deterministic parameter init (shapes from nn.Linear(2,10) / nn.Linear(10,2)),
    # pre-transposed to [in, out]; biases 1-D.
    w1 = (jax.random.uniform(k_w1, (IN_FEATURES, HIDDEN), dtype=jnp.float32) - 0.5) * 0.5
    b1 = (jax.random.uniform(k_b1, (HIDDEN,), dtype=jnp.float32) - 0.5) * 0.5
    w2 = (jax.random.uniform(k_w2, (HIDDEN, CLASSES), dtype=jnp.float32) - 0.5) * 0.5
    b2 = (jax.random.uniform(k_b2, (CLASSES,), dtype=jnp.float32) - 0.5) * 0.5

    out = jax.jit(network_forward)(x, w1, b1, w2, b2)
    jax.block_until_ready(out)

    ref = reference_forward(x, w1, b1, w2, b2)
    assert out.shape == (B, CLASSES)
    # pl.reciprocal(approx=True) (EUP vrcp) carries ~1e-4 relative error; tolerance covers
    # that while still catching real bugs.
    assert jnp.allclose(out, ref, atol=1e-3, rtol=1e-3), "mismatch vs reference"
    assert jnp.allclose(jnp.sum(out, axis=1), 1.0, atol=1e-5), "softmax rows must sum to 1"

    print("KERNEL_OK")
</pallas_src>

<mosaic_0001>
module attributes {stable_mosaic.version = 11 : i64} {
  func.func @mlp_kernel(%arg0: i32, %arg1: memref<10x4xf32, #tpu.memory_space<smem>>, %arg2: memref<1xf32, #tpu.memory_space<smem>>, %arg3: memref<2x8x128xf32, #tpu.memory_space<vmem>>, %arg4: memref<2x8x128xf32, #tpu.memory_space<vmem>>) attributes {dimension_semantics = [#tpu.dimension_semantics<parallel>], iteration_bounds = array<i64: 1>, scalar_prefetch = 0 : i64, scratch_operands = 0 : i64, tpu.core_type = #tpu.core_type<tc>, window_params = [{transform_indices = @transform_0, window_bounds = array<i64: 10, 4>}, {transform_indices = @transform_1, window_bounds = array<i64: 1>}, {transform_indices = @transform_2, window_bounds = array<i64: 2, 8, 128>}, {transform_indices = @transform_3, window_bounds = array<i64: 2, 8, 128>}]} {
    %c0 = arith.constant 0 : index
    %c0_0 = arith.constant 0 : index
    %c0_1 = arith.constant 0 : index
    %0 = vector.load %arg3[%c0, %c0_0, %c0_1] : memref<2x8x128xf32, #tpu.memory_space<vmem>>, vector<1x8x128xf32>
    %1 = vector.shape_cast %0 : vector<1x8x128xf32> to vector<8x128xf32>
    %c1 = arith.constant 1 : index
    %c0_2 = arith.constant 0 : index
    %c0_3 = arith.constant 0 : index
    %2 = vector.load %arg3[%c1, %c0_2, %c0_3] : memref<2x8x128xf32, #tpu.memory_space<vmem>>, vector<1x8x128xf32>
    %3 = vector.shape_cast %2 : vector<1x8x128xf32> to vector<8x128xf32>
    %c0_4 = arith.constant 0 : index
    %4 = memref.load %arg2[%c0_4] : memref<1xf32, #tpu.memory_space<smem>>
    %cst = arith.constant 0.000000e+00 : f32
    %5 = vector.broadcast %cst : f32 to vector<8x128xf32>
    %6 = vector.broadcast %4 : f32 to vector<8x128xf32>
    %7 = arith.addf %6, %5 : vector<8x128xf32>
    %c0_5 = arith.constant 0 : index
    %c0_6 = arith.constant 0 : index
    %8 = memref.load %arg1[%c0_5, %c0_6] : memref<10x4xf32, #tpu.memory_space<smem>>
    %9 = vector.broadcast %8 : f32 to vector<8x128xf32>
    %10 = arith.mulf %9, %1 : vector<8x128xf32>
    %c0_7 = arith.constant 0 : index
    %c1_8 = arith.constant 1 : index
    %11 = memref.load %arg1[%c0_7, %c1_8] : memref<10x4xf32, #tpu.memory_space<smem>>
    %12 = vector.broadcast %11 : f32 to vector<8x128xf32>
    %13 = arith.mulf %12, %3 : vector<8x128xf32>
    %14 = arith.addf %10, %13 : vector<8x128xf32>
    %c0_9 = arith.constant 0 : index
    %c2 = arith.constant 2 : index
    %15 = memref.load %arg1[%c0_9, %c2] : memref<10x4xf32, #tpu.memory_space<smem>>
    %16 = vector.broadcast %15 : f32 to vector<8x128xf32>
    %17 = arith.addf %14, %16 : vector<8x128xf32>
    %cst_10 = arith.constant 0.000000e+00 : f32
    %18 = vector.broadcast %cst_10 : f32 to vector<8x128xf32>
    %19 = arith.maximumf %17, %18 : vector<8x128xf32>
    %c0_11 = arith.constant 0 : index
    %c3 = arith.constant 3 : index
    %20 = memref.load %arg1[%c0_11, %c3] : memref<10x4xf32, #tpu.memory_space<smem>>
    %21 = vector.broadcast %20 : f32 to vector<8x128xf32>
    %22 = arith.mulf %21, %19 : vector<8x128xf32>
    %23 = arith.addf %7, %22 : vector<8x128xf32>
    %c1_12 = arith.constant 1 : index
    %c0_13 = arith.constant 0 : index
    %24 = memref.load %arg1[%c1_12, %c0_13] : memref<10x4xf32, #tpu.memory_space<smem>>
    %25 = vector.broadcast %24 : f32 to vector<8x128xf32>
    %26 = arith.mulf %25, %1 : vector<8x128xf32>
    %c1_14 = arith.constant 1 : index
    %c1_15 = arith.constant 1 : index
    %27 = memref.load %arg1[%c1_14, %c1_15] : memref<10x4xf32, #tpu.memory_space<smem>>
    %28 = vector.broadcast %27 : f32 to vector<8x128xf32>
    %29 = arith.mulf %28, %3 : vector<8x128xf32>
    %30 = arith.addf %26, %29 : vector<8x128xf32>
    %c1_16 = arith.constant 1 : index
    %c2_17 = arith.constant 2 : index
    %31 = memref.load %arg1[%c1_16, %c2_17] : memref<10x4xf32, #tpu.memory_space<smem>>
    %32 = vector.broadcast %31 : f32 to vector<8x128xf32>
    %33 = arith.addf %30, %32 : vector<8x128xf32>
    %cst_18 = arith.constant 0.000000e+00 : f32
    %34 = vector.broadcast %cst_18 : f32 to vector<8x128xf32>
    %35 = arith.maximumf %33, %34 : vector<8x128xf32>
    %c1_19 = arith.constant 1 : index
    %c3_20 = arith.constant 3 : index
    %36 = memref.load %arg1[%c1_19, %c3_20] : memref<10x4xf32, #tpu.memory_space<smem>>
    %37 = vector.broadcast %36 : f32 to vector<8x128xf32>
    %38 = arith.mulf %37, %35 : vector<8x128xf32>
    %39 = arith.addf %23, %38 : vector<8x128xf32>
    %c2_21 = arith.constant 2 : index
    %c0_22 = arith.constant 0 : index
    %40 = memref.load %arg1[%c2_21, %c0_22] : memref<10x4xf32, #tpu.memory_space<smem>>
    %41 = vector.broadcast %40 : f32 to vector<8x128xf32>
    %42 = arith.mulf %41, %1 : vector<8x128xf32>
    %c2_23 = arith.constant 2 : index
    %c1_24 = arith.constant 1 : index
    %43 = memref.load %arg1[%c2_23, %c1_24] : memref<10x4xf32, #tpu.memory_space<smem>>
    %44 = vector.broadcast %43 : f32 to vector<8x128xf32>
    %45 = arith.mulf %44, %3 : vector<8x128xf32>
    %46 = arith.addf %42, %45 : vector<8x128xf32>
    %c2_25 = arith.constant 2 : index
    %c2_26 = arith.constant 2 : index
    %47 = memref.load %arg1[%c2_25, %c2_26] : memref<10x4xf32, #tpu.memory_space<smem>>
    %48 = vector.broadcast %47 : f32 to vector<8x128xf32>
    %49 = arith.addf %46, %48 : vector<8x128xf32>
    %cst_27 = arith.constant 0.000000e+00 : f32
    %50 = vector.broadcast %cst_27 : f32 to vector<8x128xf32>
    %51 = arith.maximumf %49, %50 : vector<8x128xf32>
    %c2_28 = arith.constant 2 : index
    %c3_29 = arith.constant 3 : index
    %52 = memref.load %arg1[%c2_28, %c3_29] : memref<10x4xf32, #tpu.memory_space<smem>>
    %53 = vector.broadcast %52 : f32 to vector<8x128xf32>
    %54 = arith.mulf %53, %51 : vector<8x128xf32>
    %55 = arith.addf %39, %54 : vector<8x128xf32>
    %c3_30 = arith.constant 3 : index
    %c0_31 = arith.constant 0 : index
    %56 = memref.load %arg1[%c3_30, %c0_31] : memref<10x4xf32, #tpu.memory_space<smem>>
    %57 = vector.broadcast %56 : f32 to vector<8x128xf32>
    %58 = arith.mulf %57, %1 : vector<8x128xf32>
    %c3_32 = arith.constant 3 : index
    %c1_33 = arith.constant 1 : index
    %59 = memref.load %arg1[%c3_32, %c1_33] : memref<10x4xf32, #tpu.memory_space<smem>>
    %60 = vector.broadcast %59 : f32 to vector<8x128xf32>
    %61 = arith.mulf %60, %3 : vector<8x128xf32>
    %62 = arith.addf %58, %61 : vector<8x128xf32>
    %c3_34 = arith.constant 3 : index
    %c2_35 = arith.constant 2 : index
    %63 = memref.load %arg1[%c3_34, %c2_35] : memref<10x4xf32, #tpu.memory_space<smem>>
    %64 = vector.broadcast %63 : f32 to vector<8x128xf32>
    %65 = arith.addf %62, %64 : vector<8x128xf32>
    %cst_36 = arith.constant 0.000000e+00 : f32
    %66 = vector.broadcast %cst_36 : f32 to vector<8x128xf32>
    %67 = arith.maximumf %65, %66 : vector<8x128xf32>
    %c3_37 = arith.constant 3 : index
    %c3_38 = arith.constant 3 : index
    %68 = memref.load %arg1[%c3_37, %c3_38] : memref<10x4xf32, #tpu.memory_space<smem>>
    %69 = vector.broadcast %68 : f32 to vector<8x128xf32>
    %70 = arith.mulf %69, %67 : vector<8x128xf32>
    %71 = arith.addf %55, %70 : vector<8x128xf32>
    %c4 = arith.constant 4 : index
    %c0_39 = arith.constant 0 : index
    %72 = memref.load %arg1[%c4, %c0_39] : memref<10x4xf32, #tpu.memory_space<smem>>
    %73 = vector.broadcast %72 : f32 to vector<8x128xf32>
    %74 = arith.mulf %73, %1 : vector<8x128xf32>
    %c4_40 = arith.constant 4 : index
    %c1_41 = arith.constant 1 : index
    %75 = memref.load %arg1[%c4_40, %c1_41] : memref<10x4xf32, #tpu.memory_space<smem>>
    %76 = vector.broadcast %75 : f32 to vector<8x128xf32>
    %77 = arith.mulf %76, %3 : vector<8x128xf32>
    %78 = arith.addf %74, %77 : vector<8x128xf32>
    %c4_42 = arith.constant 4 : index
    %c2_43 = arith.constant 2 : index
    %79 = memref.load %arg1[%c4_42, %c2_43] : memref<10x4xf32, #tpu.memory_space<smem>>
    %80 = vector.broadcast %79 : f32 to vector<8x128xf32>
    %81 = arith.addf %78, %80 : vector<8x128xf32>
    %cst_44 = arith.constant 0.000000e+00 : f32
    %82 = vector.broadcast %cst_44 : f32 to vector<8x128xf32>
    %83 = arith.maximumf %81, %82 : vector<8x128xf32>
    %c4_45 = arith.constant 4 : index
    %c3_46 = arith.constant 3 : index
    %84 = memref.load %arg1[%c4_45, %c3_46] : memref<10x4xf32, #tpu.memory_space<smem>>
    %85 = vector.broadcast %84 : f32 to vector<8x128xf32>
    %86 = arith.mulf %85, %83 : vector<8x128xf32>
    %87 = arith.addf %71, %86 : vector<8x128xf32>
    %c5 = arith.constant 5 : index
    %c0_47 = arith.constant 0 : index
    %88 = memref.load %arg1[%c5, %c0_47] : memref<10x4xf32, #tpu.memory_space<smem>>
    %89 = vector.broadcast %88 : f32 to vector<8x128xf32>
    %90 = arith.mulf %89, %1 : vector<8x128xf32>
    %c5_48 = arith.constant 5 : index
    %c1_49 = arith.constant 1 : index
    %91 = memref.load %arg1[%c5_48, %c1_49] : memref<10x4xf32, #tpu.memory_space<smem>>
    %92 = vector.broadcast %91 : f32 to vector<8x128xf32>
    %93 = arith.mulf %92, %3 : vector<8x128xf32>
    %94 = arith.addf %90, %93 : vector<8x128xf32>
    %c5_50 = arith.constant 5 : index
    %c2_51 = arith.constant 2 : index
    %95 = memref.load %arg1[%c5_50, %c2_51] : memref<10x4xf32, #tpu.memory_space<smem>>
    %96 = vector.broadcast %95 : f32 to vector<8x128xf32>
    %97 = arith.addf %94, %96 : vector<8x128xf32>
    %cst_52 = arith.constant 0.000000e+00 : f32
    %98 = vector.broadcast %cst_52 : f32 to vector<8x128xf32>
    %99 = arith.maximumf %97, %98 : vector<8x128xf32>
    %c5_53 = arith.constant 5 : index
    %c3_54 = arith.constant 3 : index
    %100 = memref.load %arg1[%c5_53, %c3_54] : memref<10x4xf32, #tpu.memory_space<smem>>
    %101 = vector.broadcast %100 : f32 to vector<8x128xf32>
    %102 = arith.mulf %101, %99 : vector<8x128xf32>
    %103 = arith.addf %87, %102 : vector<8x128xf32>
    %c6 = arith.constant 6 : index
    %c0_55 = arith.constant 0 : index
    %104 = memref.load %arg1[%c6, %c0_55] : memref<10x4xf32, #tpu.memory_space<smem>>
    %105 = vector.broadcast %104 : f32 to vector<8x128xf32>
    %106 = arith.mulf %105, %1 : vector<8x128xf32>
    %c6_56 = arith.constant 6 : index
    %c1_57 = arith.constant 1 : index
    %107 = memref.load %arg1[%c6_56, %c1_57] : memref<10x4xf32, #tpu.memory_space<smem>>
    %108 = vector.broadcast %107 : f32 to vector<8x128xf32>
    %109 = arith.mulf %108, %3 : vector<8x128xf32>
    %110 = arith.addf %106, %109 : vector<8x128xf32>
    %c6_58 = arith.constant 6 : index
    %c2_59 = arith.constant 2 : index
    %111 = memref.load %arg1[%c6_58, %c2_59] : memref<10x4xf32, #tpu.memory_space<smem>>
    %112 = vector.broadcast %111 : f32 to vector<8x128xf32>
    %113 = arith.addf %110, %112 : vector<8x128xf32>
    %cst_60 = arith.constant 0.000000e+00 : f32
    %114 = vector.broadcast %cst_60 : f32 to vector<8x128xf32>
    %115 = arith.maximumf %113, %114 : vector<8x128xf32>
    %c6_61 = arith.constant 6 : index
    %c3_62 = arith.constant 3 : index
    %116 = memref.load %arg1[%c6_61, %c3_62] : memref<10x4xf32, #tpu.memory_space<smem>>
    %117 = vector.broadcast %116 : f32 to vector<8x128xf32>
    %118 = arith.mulf %117, %115 : vector<8x128xf32>
    %119 = arith.addf %103, %118 : vector<8x128xf32>
    %c7 = arith.constant 7 : index
    %c0_63 = arith.constant 0 : index
    %120 = memref.load %arg1[%c7, %c0_63] : memref<10x4xf32, #tpu.memory_space<smem>>
    %121 = vector.broadcast %120 : f32 to vector<8x128xf32>
    %122 = arith.mulf %121, %1 : vector<8x128xf32>
    %c7_64 = arith.constant 7 : index
    %c1_65 = arith.constant 1 : index
    %123 = memref.load %arg1[%c7_64, %c1_65] : memref<10x4xf32, #tpu.memory_space<smem>>
    %124 = vector.broadcast %123 : f32 to vector<8x128xf32>
    %125 = arith.mulf %124, %3 : vector<8x128xf32>
    %126 = arith.addf %122, %125 : vector<8x128xf32>
    %c7_66 = arith.constant 7 : index
    %c2_67 = arith.constant 2 : index
    %127 = memref.load %arg1[%c7_66, %c2_67] : memref<10x4xf32, #tpu.memory_space<smem>>
    %128 = vector.broadcast %127 : f32 to vector<8x128xf32>
    %129 = arith.addf %126, %128 : vector<8x128xf32>
    %cst_68 = arith.constant 0.000000e+00 : f32
    %130 = vector.broadcast %cst_68 : f32 to vector<8x128xf32>
    %131 = arith.maximumf %129, %130 : vector<8x128xf32>
    %c7_69 = arith.constant 7 : index
    %c3_70 = arith.constant 3 : index
    %132 = memref.load %arg1[%c7_69, %c3_70] : memref<10x4xf32, #tpu.memory_space<smem>>
    %133 = vector.broadcast %132 : f32 to vector<8x128xf32>
    %134 = arith.mulf %133, %131 : vector<8x128xf32>
    %135 = arith.addf %119, %134 : vector<8x128xf32>
    %c8 = arith.constant 8 : index
    %c0_71 = arith.constant 0 : index
    %136 = memref.load %arg1[%c8, %c0_71] : memref<10x4xf32, #tpu.memory_space<smem>>
    %137 = vector.broadcast %136 : f32 to vector<8x128xf32>
    %138 = arith.mulf %137, %1 : vector<8x128xf32>
    %c8_72 = arith.constant 8 : index
    %c1_73 = arith.constant 1 : index
    %139 = memref.load %arg1[%c8_72, %c1_73] : memref<10x4xf32, #tpu.memory_space<smem>>
    %140 = vector.broadcast %139 : f32 to vector<8x128xf32>
    %141 = arith.mulf %140, %3 : vector<8x128xf32>
    %142 = arith.addf %138, %141 : vector<8x128xf32>
    %c8_74 = arith.constant 8 : index
    %c2_75 = arith.constant 2 : index
    %143 = memref.load %arg1[%c8_74, %c2_75] : memref<10x4xf32, #tpu.memory_space<smem>>
    %144 = vector.broadcast %143 : f32 to vector<8x128xf32>
    %145 = arith.addf %142, %144 : vector<8x128xf32>
    %cst_76 = arith.constant 0.000000e+00 : f32
    %146 = vector.broadcast %cst_76 : f32 to vector<8x128xf32>
    %147 = arith.maximumf %145, %146 : vector<8x128xf32>
    %c8_77 = arith.constant 8 : index
    %c3_78 = arith.constant 3 : index
    %148 = memref.load %arg1[%c8_77, %c3_78] : memref<10x4xf32, #tpu.memory_space<smem>>
    %149 = vector.broadcast %148 : f32 to vector<8x128xf32>
    %150 = arith.mulf %149, %147 : vector<8x128xf32>
    %151 = arith.addf %135, %150 : vector<8x128xf32>
    %c9 = arith.constant 9 : index
    %c0_79 = arith.constant 0 : index
    %152 = memref.load %arg1[%c9, %c0_79] : memref<10x4xf32, #tpu.memory_space<smem>>
    %153 = vector.broadcast %152 : f32 to vector<8x128xf32>
    %154 = arith.mulf %153, %1 : vector<8x128xf32>
    %c9_80 = arith.constant 9 : index
    %c1_81 = arith.constant 1 : index
    %155 = memref.load %arg1[%c9_80, %c1_81] : memref<10x4xf32, #tpu.memory_space<smem>>
    %156 = vector.broadcast %155 : f32 to vector<8x128xf32>
    %157 = arith.mulf %156, %3 : vector<8x128xf32>
    %158 = arith.addf %154, %157 : vector<8x128xf32>
    %c9_82 = arith.constant 9 : index
    %c2_83 = arith.constant 2 : index
    %159 = memref.load %arg1[%c9_82, %c2_83] : memref<10x4xf32, #tpu.memory_space<smem>>
    %160 = vector.broadcast %159 : f32 to vector<8x128xf32>
    %161 = arith.addf %158, %160 : vector<8x128xf32>
    %cst_84 = arith.constant 0.000000e+00 : f32
    %162 = vector.broadcast %cst_84 : f32 to vector<8x128xf32>
    %163 = arith.maximumf %161, %162 : vector<8x128xf32>
    %c9_85 = arith.constant 9 : index
    %c3_86 = arith.constant 3 : index
    %164 = memref.load %arg1[%c9_85, %c3_86] : memref<10x4xf32, #tpu.memory_space<smem>>
    %165 = vector.broadcast %164 : f32 to vector<8x128xf32>
    %166 = arith.mulf %165, %163 : vector<8x128xf32>
    %167 = arith.addf %151, %166 : vector<8x128xf32>
    %cst_87 = arith.constant 3.000000e+01 : f32
    %168 = vector.broadcast %cst_87 : f32 to vector<8x128xf32>
    %169 = arith.minimumf %167, %168 : vector<8x128xf32>
    %170 = math.exp %169 : vector<8x128xf32>
    %cst_88 = arith.constant 1.000000e+00 : f32
    %171 = vector.broadcast %cst_88 : f32 to vector<8x128xf32>
    %172 = arith.addf %171, %170 : vector<8x128xf32>
    %173 = tpu.reciprocal %172 {approx = true} : vector<8x128xf32> -> vector<8x128xf32>
    %c0_89 = arith.constant 0 : index
    %c0_90 = arith.constant 0 : index
    %c0_91 = arith.constant 0 : index
    %174 = vector.load %arg4[%c0_89, %c0_90, %c0_91] : memref<2x8x128xf32, #tpu.memory_space<vmem>>, vector<1x8x128xf32>
    %175 = vector.shape_cast %174 : vector<1x8x128xf32> to vector<8x128xf32>
    %176 = vector.shape_cast %173 : vector<8x128xf32> to vector<1x8x128xf32>
    tpu.vector_store %arg4[%c0_89, %c0_90, %c0_91], %176 {strides = array<i32>} : memref<2x8x128xf32, #tpu.memory_space<vmem>>, vector<1x8x128xf32>,
    %cst_92 = arith.constant 1.000000e+00 : f32
    %177 = vector.broadcast %cst_92 : f32 to vector<8x128xf32>
    %178 = arith.subf %177, %173 : vector<8x128xf32>
    %c1_93 = arith.constant 1 : index
    %c0_94 = arith.constant 0 : index
    %c0_95 = arith.constant 0 : index
    %179 = vector.load %arg4[%c1_93, %c0_94, %c0_95] : memref<2x8x128xf32, #tpu.memory_space<vmem>>, vector<1x8x128xf32>
    %180 = vector.shape_cast %179 : vector<1x8x128xf32> to vector<8x128xf32>
    %181 = vector.shape_cast %178 : vector<8x128xf32> to vector<1x8x128xf32>
    tpu.vector_store %arg4[%c1_93, %c0_94, %c0_95], %181 {strides = array<i32>} : memref<2x8x128xf32, #tpu.memory_space<vmem>>, vector<1x8x128xf32>,
    return
  }
  func.func @transform_0(%arg0: i32) -> (i32, i32) {
    %c0_i32 = arith.constant 0 : i32
    %c0_i32_0 = arith.constant 0 : i32
    %c0_i32_1 = arith.constant 0 : i32
    return %c0_i32, %c0_i32_0 : i32, i32
  }
  func.func @transform_1(%arg0: i32) -> i32 {
    %c0_i32 = arith.constant 0 : i32
    %c0_i32_0 = arith.constant 0 : i32
    return %c0_i32 : i32
  }
  func.func @transform_2(%arg0: i32) -> (i32, i32, i32) {
    %c0_i32 = arith.constant 0 : i32
    %c0_i32_0 = arith.constant 0 : i32
    %c0_i32_1 = arith.constant 0 : i32
    return %c0_i32, %arg0, %c0_i32_0 : i32, i32, i32
  }
  func.func @transform_3(%arg0: i32) -> (i32, i32, i32) {
    %c0_i32 = arith.constant 0 : i32
    %c0_i32_0 = arith.constant 0 : i32
    %c0_i32_1 = arith.constant 0 : i32
    return %c0_i32, %arg0, %c0_i32_0 : i32, i32, i32
  }
}

</mosaic_0001>

<bundles_post_ra>
// kernel: network_forward.1
= control target key start
LH: loop header
LB: loop body
LE: loop exit
PB: predicated region body
PF: predicated region fallthrough
CT: control target
= control target key end

     0   :  { %9 = vsyncpa [#allocation4], 0  ;;  %s432_s0 = inlined_call_operand.vmem [shape: f32[10,4], index: 0, kind: input, shape index: {}]   ;;  %s433_s1 = inlined_call_operand.<no memory space> [shape: f32[1], index: 1, kind: input, shape index: {}]   ;;  %s434_s2 = inlined_call_operand.vmem [shape: f32[2,8,128], index: 2, kind: input, shape index: {}]   ;;  %s435_s3 = inlined_call_operand.vmem [shape: f32[2,8,128], index: 3, kind: output, shape index: {}]  }
   0x1   :  { %s15_s14 = sshll.u32 %s432_s0, 4  ;;  %s16_s14 = int_to_ptr.vmem [resolvable:$true] %s15_s14 }
   0x2   :  { %s248_s15 = scalar_lea.vmem %s16_s14, 256  ;;  %p253_p1 = scmp.lt.s32.totalorder %s16_s14, %s16_s14 }
   0x3   :  { %p249_p0 = scmp.ne.s32.totalorder %s16_s14, %s248_s15  ;;  %p254_p2 = scmp.lt.s32.totalorder %s248_s15, %s248_s15 }
   0x5   :  { %p255_p3 = por %p254_p2, %p253_p1 }
   0x7   :  { %p256_p4 = pnand %p255_p3, %p249_p0 }
   0x9   :  { %259 = shalt.err (!%p256_p4)
}
   0xa   :  { %s262_s16 = smov [#allocation3]   ;;  %s263_s17 = smov 128  }
   0xb   :  { %s264_s18 = smov 8  }
   0xc   :  { %21 = dma.vmem_to_smem %s16_s14, 256, %s262_s16, [#allocation4], %s263_s17, %s263_s17, %s264_s18  }
   0xd   :  { %260 = dma.done.wait [#allocation4], 256  }
   0xe   :  { %261 = vsyncadd [#allocation4], 4294967040 }
   0xf   :  { %29 = sfence }
  0x10   :  { %s36_s19 = sld [smem:[#allocation3]]  ;;  %s201_s20 = sld [smem:[#allocation3 + $0x1]]  ;;  %v299_v0 = vld [vmem:[%s434_s2] sm:$0xff]  ;;  %v304_v1 = vld [vmem:[%s434_s2 + $0x8] sm:$0xff]  ;;  %v34_v9 = vstv %s433_s1 }
  0x11   :  { %s288_s21 = sld [smem:[#allocation3 + $0x2]]  ;;  %s290_s0 = sld [smem:[#allocation3 + $0x3]] }
  0x12   :  { %s204_s22 = sld [smem:[#allocation3 + $0x80]]  ;;  %s205_s23 = sld [smem:[#allocation3 + $0x81]] }
  0x13   :  { %s292_s24 = sld [smem:[#allocation3 + $0x82]]  ;;  %s294_s25 = sld [smem:[#allocation3 + $0x83]] }
  0x14   :  { %s306_s30 = sld [smem:[#allocation3 + $0x100]]  ;;  %s308_s4 = sld [smem:[#allocation3 + $0x101]] }
  0x15   :  { %s310_s5 = sld [smem:[#allocation3 + $0x102]]  ;;  %s312_s6 = sld [smem:[#allocation3 + $0x103]] }
  0x16   :  { %v37_v2 = vstv %s36_s19  ;;  %v40_v3 = vstv %s201_s20  ;;  %s314_s7 = sld [smem:[#allocation3 + $0x180]]  ;;  %s316_s8 = sld [smem:[#allocation3 + $0x181]] }
  0x17   :  { %v38_v4 = vmul.f32 %v37_v2, %v299_v0  ;;  %v41_v5 = vmul.f32 %v304_v1, %v40_v3  ;;  %s320_s2 = sld [smem:[#allocation3 + $0x182]]  ;;  %s322_s9 = sld [smem:[#allocation3 + $0x183]]  ;;  %v44_v6 = vstv %s288_s21  ;;  %v48_v13 = vstv %s290_s0 }
  0x18   :  { %v52_v7 = vstv %s204_s22  ;;  %v55_v8 = vstv %s205_s23  ;;  %s325_s10 = sld [smem:[#allocation3 + $0x200]]  ;;  %s327_s11 = sld [smem:[#allocation3 + $0x201]] }
  0x19   :  { %v42_v10 = vadd.f32 %v41_v5, %v38_v4  ;;  %v53_v11 = vmul.f32 %v52_v7, %v299_v0  ;;  %v56_v12 = vmul.f32 %v304_v1, %v55_v8  ;;  %s334_s14 = sld [smem:[#allocation3 + $0x202]]  ;;  %s336_s15 = sld [smem:[#allocation3 + $0x203]]  ;;  %v59_v14 = vstv %s292_s24 }
  0x1a   :  { %v67_v15 = vstv %s306_s30  ;;  %v70_v16 = vstv %s308_s4  ;;  %s342_s16 = sld [smem:[#allocation3 + $0x280]]  ;;  %s344_s1 = sld [smem:[#allocation3 + $0x281]]  ;;  %v63_v21 = vstv %s294_s25 }
  0x1b   :  { %v45_v17 = vadd.f32 %v44_v6, %v42_v10  ;;  %v57_v18 = vadd.f32 %v56_v12, %v53_v11  ;;  %v68_v19 = vmul.f32 %v67_v15, %v299_v0  ;;  %v71_v20 = vmul.f32 %v304_v1, %v70_v16  ;;  %s352_s17 = sld [smem:[#allocation3 + $0x282]]  ;;  %s354_s18 = sld [smem:[#allocation3 + $0x300]] }
  0x1c   :  { %v74_v22 = vstv %s310_s5  ;;  %v82_v23 = vstv %s314_s7  ;;  %v85_v24 = vstv %s316_s8  ;;  %s357_s19 = sld [smem:[#allocation3 + $0x301]]  ;;  %v78_v29 = vstv %s312_s6  ;;  %s363_s20 = sld [smem:[#allocation3 + $0x283]] }
  0x1d   :  { %v46_v25 = vmax.f32 %v45_v17, 0.0  ;;  %v60_v26 = vadd.f32 %v59_v14, %v57_v18  ;;  %v72_v27 = vadd.f32 %v71_v20, %v68_v19  ;;  %v83_v28 = vmul.f32 %v82_v23, %v299_v0  ;;  %s365_s21 = sld [smem:[#allocation3 + $0x302]]  ;;  %s368_s0 = sld [smem:[#allocation3 + $0x380]] }
  0x1e   :  { %v86_v30 = vmul.f32 %v304_v1, %v85_v24  ;;  %v89_v31 = vstv %s320_s2  ;;  %v97_v32 = vstv %s325_s10  ;;  %s370_s22 = sld [smem:[#allocation3 + $0x381]]  ;;  %v93_v38 = vstv %s322_s9  ;;  %s376_s23 = sld [smem:[#allocation3 + $0x303]] }
  0x1f   :  { %v49_v33 = vmul.f32 %v48_v13, %v46_v25  ;;  %v61_v34 = vmax.f32 %v60_v26, 0.0  ;;  %v75_v35 = vadd.f32 %v74_v22, %v72_v27  ;;  %v98_v36 = vmul.f32 %v97_v32, %v299_v0  ;;  %s378_s24 = sld [smem:[#allocation3 + $0x382]]  ;;  %s383_s25 = sld [smem:[#allocation3 + $0x400]] }
  0x20   :  { %v87_v37 = vadd.f32 %v86_v30, %v83_v28  ;;  %v100_v39 = vstv %s327_s11  ;;  %v104_v40 = vstv %s334_s14  ;;  %v108_v46 = vstv %s336_s15  ;;  %s385_s26 = sld [smem:[#allocation3 + $0x401]]  ;;  %s391_s27 = sld [smem:[#allocation3 + $0x383]] }
  0x21   :  { %v50_v41 = vadd.f32 %v49_v33, %v34_v9  ;;  %v64_v42 = vmul.f32 %v63_v21, %v61_v34  ;;  %v76_v43 = vmax.f32 %v75_v35, 0.0  ;;  %v101_v44 = vmul.f32 %v304_v1, %v100_v39  ;;  %s393_s28 = sld [smem:[#allocation3 + $0x402]]  ;;  %s397_s29 = sld [smem:[#allocation3 + $0x480]] }
  0x22   :  { %v90_v45 = vadd.f32 %v89_v31, %v87_v37  ;;  %v112_v47 = vstv %s342_s16  ;;  %v115_v48 = vstv %s344_s1  ;;  %v119_v55 = vstv %s352_s17  ;;  %s399_s30 = sld [smem:[#allocation3 + $0x481]]  ;;  %s406_s4 = sld [smem:[#allocation3 + $0x482]] }
  0x23   :  { %v65_v49 = vadd.f32 %v64_v42, %v50_v41  ;;  %v79_v50 = vmul.f32 %v78_v29, %v76_v43  ;;  %v102_v51 = vadd.f32 %v101_v44, %v98_v36  ;;  %v113_v52 = vmul.f32 %v112_v47, %v299_v0  ;;  %s409_s5 = sld [smem:[#allocation3 + $0x403]] }
  0x24   :  { %v91_v53 = vmax.f32 %v90_v45, 0.0  ;;  %v116_v54 = vmul.f32 %v304_v1, %v115_v48  ;;  %v127_v56 = vstv %s354_s18  ;;  %v130_v60 = vstv %s357_s19  ;;  %s239_s6 = sld [smem:[#allocation3 + $0x483]] }
  0x25   :  { %v80_v57 = vadd.f32 %v79_v50, %v65_v49  ;;  %v105_v58 = vadd.f32 %v104_v40, %v102_v51  ;;  %v128_v59 = vmul.f32 %v127_v56, %v299_v0  ;;  %v123_v63 = vstv %s363_s20 }
  0x26   :  { %v94_v61 = vmul.f32 %v93_v38, %v91_v53  ;;  %v117_v62 = vadd.f32 %v116_v54, %v113_v52  ;;  %v131_v2 = vmul.f32 %v304_v1, %v130_v60  ;;  %v134_v4 = vstv %s365_s21 }
  0x27   :  { %v106_v3 = vmax.f32 %v105_v58, 0.0  ;;  %v142_v5 = vstv %s368_s0  ;;  %v145_v6 = vstv %s370_s22  ;;  %v138_v12 = vstv %s376_s23 }
  0x28   :  { %v95_v7 = vadd.f32 %v94_v61, %v80_v57  ;;  %v120_v8 = vadd.f32 %v119_v55, %v117_v62  ;;  %v132_v9 = vadd.f32 %v131_v2, %v128_v59  ;;  %v143_v10 = vmul.f32 %v142_v5, %v299_v0 }
  0x29   :  { %v109_v11 = vmul.f32 %v108_v46, %v106_v3  ;;  %v146_v13 = vmul.f32 %v304_v1, %v145_v6  ;;  %v149_v14 = vstv %s378_s24  ;;  %v157_v17 = vstv %s383_s25 }
  0x2a   :  { %v121_v15 = vmax.f32 %v120_v8, 0.0  ;;  %v135_v16 = vadd.f32 %v134_v4, %v132_v9  ;;  %v160_v18 = vstv %s385_s26  ;;  %v158_v21 = vmul.f32 %v157_v17, %v299_v0 }
  0x2b   :  { %v110_v19 = vadd.f32 %v109_v11, %v95_v7  ;;  %v147_v20 = vadd.f32 %v146_v13, %v143_v10  ;;  %v161_v22 = vmul.f32 %v304_v1, %v160_v18  ;;  %v153_v25 = vstv %s391_s27 }
  0x2c   :  { %v124_v23 = vmul.f32 %v123_v63, %v121_v15  ;;  %v136_v24 = vmax.f32 %v135_v16, 0.0  ;;  %v164_v26 = vstv %s393_s28  ;;  %v172_v29 = vstv %s397_s29 }
  0x2d   :  { %v150_v27 = vadd.f32 %v149_v14, %v147_v20  ;;  %v162_v28 = vadd.f32 %v161_v22, %v158_v21  ;;  %v175_v30 = vstv %s399_s30  ;;  %v173_v33 = vmul.f32 %v172_v29, %v299_v0 }
  0x2e   :  { %v125_v31 = vadd.f32 %v124_v23, %v110_v19  ;;  %v139_v32 = vmul.f32 %v138_v12, %v136_v24  ;;  %v176_v34 = vmul.f32 %v304_v1, %v175_v30  ;;  %v179_v37 = vstv %s406_s4 }
  0x2f   :  { %v151_v35 = vmax.f32 %v150_v27, 0.0  ;;  %v165_v36 = vadd.f32 %v164_v26, %v162_v28  ;;  %v168_v39 = vstv %s409_s5  ;;  %v183_v46 = vstv %s239_s6 }
  0x30   :  { %v140_v38 = vadd.f32 %v139_v32, %v125_v31  ;;  %v177_v40 = vadd.f32 %v176_v34, %v173_v33 }
  0x31   :  { %v154_v41 = vmul.f32 %v153_v25, %v151_v35  ;;  %v166_v42 = vmax.f32 %v165_v36, 0.0 }
  0x32   :  { %v180_v43 = vadd.f32 %v179_v37, %v177_v40 }
  0x33   :  { %v155_v44 = vadd.f32 %v154_v41, %v140_v38  ;;  %v169_v45 = vmul.f32 %v168_v39, %v166_v42 }
  0x34   :  { %v181_v47 = vmax.f32 %v180_v43, 0.0 }
  0x35   :  { %v170_v48 = vadd.f32 %v169_v45, %v155_v44 }
  0x36   :  { %v184_v49 = vmul.f32 %v183_v46, %v181_v47 }
  0x38   :  { %v185_v50 = vadd.f32 %v184_v49, %v170_v48 }
  0x3a   :  { %v186_v51 = vmin.f32 %v185_v50, 30.0 }
  0x3c   :  { %v187_v0 = vmul.f32 1.442695, %v186_v51 }
  0x3e   :  { %244 = vpow2.f32 %v187_v0 }
  0x48   :  { %v245_v1 = vpop.eup %244 }
  0x49   :  { %v189_v52 = vadd.f32 1.0, %v245_v1 }
  0x4b   :  { %246 = vrcp.f32 %v189_v52 }
  0x55   :  { %v247_v53 = vpop.eup %246 }
  0x56   :  { %191 = vst [vmem:[%s435_s3] sm:$0xff] %v247_v53  ;;  %v192_v54 = vsub.f32 1.0, %v247_v53 }
  0x58   :  { %240 = vst [vmem:[%s435_s3 + $0x8] sm:$0xff] %v192_v54 }
  0x59   :  { %199 = vsyncpa [#allocation4], 1 }

</bundles_post_ra>
